<compile_context>
chip_gen: v7x
topology: tpu7x:2x2x1
jax: 0.10.0
libtpu: 0.0.40
codegen_flags: <defaults>
</compile_context>

<pallas_src>
import functools

import numpy as np
import jax
import jax.numpy as jnp
from jax.experimental import pallas as pl
from jax.experimental.pallas import tpu as pltpu


# ---------------------------------------------------------------------------
# Pallas kernel: Linear(32,32)+ReLU -> Linear(32,16)+ReLU -> Linear(16,8),
# then weighted mean / variance reduction over the NV (view) axis.
# Layout: channels on sublanes, points on lanes.
# ---------------------------------------------------------------------------
def _mlp_meanvar_kernel(vf_ref, wt_ref, w1_ref, b1_ref, w2_ref, b2_ref,
                        w3_ref, b3_ref, out_ref):
    NV, C, TN = vf_ref.shape

    w1 = w1_ref[...]                     # (32, 32) bf16  (PyTorch (out, in))
    w2 = w2_ref[...]                     # (16, 32) bf16
    w3 = w3_ref[...]                     # (8, 16)  bf16

    # Hoist the bias lane-broadcasts out of the unrolled NV loop (JAX does not
    # CSE broadcast_in_dim; without this every view re-emits the broadcast).
    b1 = jnp.broadcast_to(b1_ref[...], (32, TN))      # f32
    b2 = jnp.broadcast_to(b2_ref[...], (16, TN))
    b3 = jnp.broadcast_to(b3_ref[...], (8, TN))

    # Single-pass weighted mean/variance over views:
    #   s  = sum_v w_v f_v                     (= mean)
    #   q  = sum_v w_v f_v^2
    #   sw = sum_v w_v
    #   var = q - mean^2 * (2 - sw)            (exact rewrite of the torch
    #                                            two-pass formula; clamp >= 0
    #                                            against f32 cancellation)
    s = jnp.zeros((8, TN), jnp.float32)
    q = jnp.zeros((8, TN), jnp.float32)
    sw = jnp.zeros((1, TN), jnp.float32)

    # NV is small and static -> the Python loop unrolls; the three matmul
    # chains per view stay independent so both MXUs (v6e/v7x) get work.
    for v in range(NV):
        x = vf_ref[v]                                               # (32, TN) bf16
        h1 = (jnp.dot(w1, x, preferred_element_type=jnp.float32) + b1)
        h1 = jnp.maximum(h1.astype(jnp.bfloat16), 0.0)              # ReLU in bf16
        h2 = (jnp.dot(w2, h1, preferred_element_type=jnp.float32) + b2)
        h2 = jnp.maximum(h2.astype(jnp.bfloat16), 0.0)
        f = jnp.dot(w3, h2, preferred_element_type=jnp.float32) + b3  # (8, TN) f32

        w_v = wt_ref[v:v + 1, :]                                    # (1, TN) f32
        s = s + w_v * f
        q = q + w_v * (f * f)
        sw = sw + w_v

    mean = s
    var = jnp.maximum(q - mean * mean * (2.0 - sw), 0.0)

    # Two sublane-aligned, lane-dense stores -- no concatenate copy.
    out_ref[0:8, :] = mean.astype(out_ref.dtype)
    out_ref[8:16, :] = var.astype(out_ref.dtype)


def _round_up(x, m):
    return ((x + m - 1) // m) * m


def _choose_tiling(n_points, max_tile):
    """Return (tile_n, grid_n, n_padded).

    tile_n is always a multiple of 128 and <= max_tile; n_padded = grid_n *
    tile_n (the wrapper zero-pads to that length), so the kernel never sees a
    giant single block.  When everything fits one tile we still split into two
    grid steps so v7x's second TensorCore is used.
    """
    tile = min(max_tile, _round_up(n_points, 128))
    grid = pl.cdiv(n_points, tile)
    if grid == 1 and tile >= 256:
        tile = _round_up(pl.cdiv(tile, 2), 128)
        grid = pl.cdiv(n_points, tile)
    return tile, grid, grid * tile


def mlp_meanvar(vf, wt, params, max_tile=8192):
    """vf: [NV, 32, N] sampled features, wt: [NV, N] view weights ->
    [16, N] = concat(weighted mean, weighted var) over views."""
    NV, C, N = vf.shape
    assert C == 32, "FeatureVolume MLP expects 32 input channels"

    tile_n, grid_n, n_pad = _choose_tiling(N, max_tile)
    if n_pad != N:
        # Zero-pad points: padded weights are 0 -> mean/var 0, sliced off below.
        vf = jnp.pad(vf, ((0, 0), (0, 0), (0, n_pad - N)))
        wt = jnp.pad(wt, ((0, 0), (0, n_pad - N)))

    w1 = params["w1"].astype(jnp.bfloat16)
    w2 = params["w2"].astype(jnp.bfloat16)
    w3 = params["w3"].astype(jnp.bfloat16)
    b1 = params["b1"].astype(jnp.float32)
    b2 = params["b2"].astype(jnp.float32)
    b3 = params["b3"].astype(jnp.float32)

    in_specs = [
        pl.BlockSpec((NV, C, tile_n), lambda i: (0, 0, i)),   # activations
        pl.BlockSpec((NV, tile_n), lambda i: (0, i)),         # view weights
        pl.BlockSpec((32, 32), lambda i: (0, 0)),
        pl.BlockSpec((32, 1), lambda i: (0, 0)),
        pl.BlockSpec((16, 32), lambda i: (0, 0)),
        pl.BlockSpec((16, 1), lambda i: (0, 0)),
        pl.BlockSpec((8, 16), lambda i: (0, 0)),
        pl.BlockSpec((8, 1), lambda i: (0, 0)),
    ]
    out_specs = pl.BlockSpec((16, tile_n), lambda i: (0, i))

    out = pl.pallas_call(
        _mlp_meanvar_kernel,
        out_shape=jax.ShapeDtypeStruct((16, n_pad), jnp.float32),
        grid=(grid_n,),
        in_specs=in_specs,
        out_specs=out_specs,
        compiler_params=pltpu.CompilerParams(
            dimension_semantics=("parallel",),
            vmem_limit_bytes=32 * 1024 * 1024),
    )(vf.astype(jnp.bfloat16), wt.astype(jnp.float32),
      w1, b1, w2, b2, w3, b3)

    return out[:, :N] if n_pad != N else out


# ---------------------------------------------------------------------------
# Plain JAX glue: projection, bilinear grid sample (data-dependent gather),
# mask / weight bookkeeping.  Semantics match the VolRecon grid_sample_2d
# (align_corners=True bilinear + in-bounds mask).
# Channel-last gather: each corner fetches contiguous 32-channel rows.
# TODO(synk): the bilinear gather/blend + transpose still make extra HBM
# passes in XLA; fusing the sampling into the Pallas kernel (feats resident in
# VMEM, per-tile corner indices + blend weights) is left for a future rev.
# ---------------------------------------------------------------------------
def grid_sample_2d_rows(feats_nhwc, grid):
    # feats_nhwc: (NV, H, W, C); grid: (NV, P, 2) in [-1, 1]
    NV, H, W, C = feats_nhwc.shape
    ix = (grid[..., 0] + 1.0) / 2.0 * (W - 1)
    iy = (grid[..., 1] + 1.0) / 2.0 * (H - 1)

    ix0 = jnp.floor(ix)
    iy0 = jnp.floor(iy)
    ix1 = ix0 + 1.0
    iy1 = iy0 + 1.0

    w_nw = (ix1 - ix) * (iy1 - iy)
    w_ne = (ix - ix0) * (iy1 - iy)
    w_sw = (ix1 - ix) * (iy - iy0)
    w_se = (ix - ix0) * (iy - iy0)

    mask = ((ix >= 0) & (ix <= W - 1) & (iy >= 0) & (iy <= H - 1)).astype(jnp.float32)

    flat = feats_nhwc.reshape(NV, H * W, C)

    def gather(iy_, ix_):
        iy_c = jnp.clip(iy_, 0, H - 1).astype(jnp.int32)
        ix_c = jnp.clip(ix_, 0, W - 1).astype(jnp.int32)
        idx = iy_c * W + ix_c                                        # (NV, P)
        return jax.vmap(lambda f, i: jnp.take(f, i, axis=0, mode="clip"))(flat, idx)

    out = (gather(iy0, ix0) * w_nw[..., None]
           + gather(iy0, ix1) * w_ne[..., None]
           + gather(iy1, ix0) * w_sw[..., None]
           + gather(iy1, ix1) * w_se[..., None])                     # (NV, P, C)
    return out, mask


@functools.partial(jax.jit, static_argnums=(4, 6, 7))
def feature_volume_forward(feats, ref_poses, Ks, bbox, img_shape, params,
                           volume_reso, volume_size):
    """feats: [NV, 32, H, W]; ref_poses: [NV, 3, 4]; Ks: [NV, 3, 3]."""
    NV, C, Hf, Wf = feats.shape
    h_img, w_img = img_shape[-2:]
    normalizer = jnp.array([w_img, h_img], dtype=feats.dtype)

    # Homogeneous projection matrices (world -> pixel).
    eye4 = jnp.eye(4, dtype=feats.dtype)
    ref_poses_h = jnp.broadcast_to(eye4, (NV, 4, 4)).at[:, :3, :4].set(ref_poses)
    intrinsics_pad = jnp.broadcast_to(eye4, (NV, 4, 4)).at[:, :3, :3].set(Ks)
    w2pixel = intrinsics_pad @ ref_poses_h                            # (NV, 4, 4)

    # Voxel-center grid (same construction as __init__).
    voxel_size = volume_size / volume_reso
    half = voxel_size / 2.0
    line = np.linspace(0, volume_reso - 1, volume_reso) * voxel_size + half
    gx, gy, gz = np.meshgrid(line, line, line, indexing="ij")
    xyz = jnp.asarray(np.stack([gx, gy, gz]), dtype=feats.dtype)      # (3, R, R, R)
    bbox0 = jnp.asarray(bbox[0], dtype=feats.dtype)[:, None, None, None]
    volume_xyz = (xyz + bbox0).reshape(3, -1)                         # (3, N)  X-major
    N = volume_xyz.shape[1]
    volume_xyz_homo = jnp.concatenate(
        [volume_xyz, jnp.ones_like(volume_xyz[0:1])], axis=0)         # (4, N)

    # Project voxel centers into every view.
    pix_homo = jnp.einsum("vij,jn->vin", w2pixel, volume_xyz_homo)[:, :3]  # (NV,3,N)
    mask_valid_depth = (pix_homo[:, 2] > 0).astype(jnp.float32)       # (NV, N)
    pix = pix_homo / pix_homo[:, 2:3]
    pix = jnp.transpose(pix[:, :2], (0, 2, 1))                        # (NV, N, 2)
    # NOTE: the reference literally divides by [w, h] and subtracts 1
    # (not the usual 2*p/(W-1)-1 align_corners formula); reproduced as-is.
    grid = pix / normalizer - 1.0                                     # (NV, N, 2)

    # Channel-last bilinear sampling (contiguous 32-ch rows per corner).
    feats_nhwc = jnp.transpose(feats, (0, 2, 3, 1))                   # (NV, H, W, C)
    sampled, mask = grid_sample_2d_rows(feats_nhwc, grid)             # (NV,N,C), (NV,N)
    mask = mask * mask_valid_depth

    # View-weight computation: normalize over dim=1 of (NV, X, Y, Z),
    # exactly as in the reference module.
    R = volume_reso
    mask4 = mask.reshape(NV, R, R, R)
    weight = mask4 / (jnp.sum(mask4, axis=1, keepdims=True) + 1e-8)
    wt = weight.reshape(NV, N)

    # Points-on-lanes activation layout for the kernel: (NV, C, N), bf16.
    # NOTE: sampled features are bf16 in the kernel (MXU inputs); the PyTorch
    # reference runs f32 end-to-end -- small, deliberate numerical deviation.
    vf = jnp.transpose(sampled.astype(jnp.bfloat16), (0, 2, 1))       # (NV, C, N)

    # Hot path in Pallas: MLP compression + weighted mean / var over views.
    mean_var = mlp_meanvar(vf, wt, params)                            # (16, N)

    volume_mean_var = mean_var.reshape(1, 16, R, R, R)                # (1,16,X,Y,Z)
    volume_mean_var = jnp.transpose(volume_mean_var, (0, 1, 4, 3, 2)) # (1,16,Z,Y,X)

    # TODO(synk): Volume3DUnet definition is not provided in the reference
    # module; the 3D U-Net regularization step is skipped here.
    return volume_mean_var


# ---------------------------------------------------------------------------
# Deterministic parameter init (shapes from nn.Sequential(Linear(32,32),
# ReLU, Linear(32,16), ReLU, Linear(16,8))), stored in PyTorch (out, in)
# layout so the kernel computes W @ x + b directly.
# ---------------------------------------------------------------------------
def init_params(key):
    ks = jax.random.split(key, 6)

    def lin(kw, kb, fin, fout):
        w = jax.random.normal(kw, (fout, fin), jnp.float32) / np.sqrt(fin)
        b = jax.random.normal(kb, (fout, 1), jnp.float32) * 0.01
        return w, b

    w1, b1 = lin(ks[0], ks[1], 32, 32)
    w2, b2 = lin(ks[2], ks[3], 32, 16)
    w3, b3 = lin(ks[4], ks[5], 16, 8)
    return dict(w1=w1, b1=b1, w2=w2, b2=b2, w3=w3, b3=b3)


if __name__ == "__main__":
    key = jax.random.PRNGKey(0)
    kf, kp = jax.random.split(key)

    NV, C, Hf, Wf = 2, 32, 24, 32         # feature maps (NCHW)
    img_h, img_w = 48, 64                 # original image size (for normalizer)
    volume_reso, volume_size = 8, 0.3     # 8^3 = 512 voxels

    feats = jax.random.normal(kf, (NV, C, Hf, Wf), jnp.float32)

    # Intrinsics in image-resolution pixels.
    K = jnp.array([[60.0, 0.0, img_w / 2.0],
                   [0.0, 60.0, img_h / 2.0],
                   [0.0, 0.0, 1.0]], jnp.float32)
    Ks = jnp.broadcast_to(K, (NV, 3, 3))

    # Simple world->camera poses: identity rotation, cameras behind the volume.
    t = jnp.array([[0.0, 0.0, 0.5],
                   [0.02, -0.01, 0.55]], jnp.float32)
    Rm = jnp.broadcast_to(jnp.eye(3, dtype=jnp.float32), (NV, 3, 3))
    ref_poses = jnp.concatenate([Rm, t[:, :, None]], axis=-1)         # (NV, 3, 4)

    bbox = jnp.array([[-0.15, -0.15, 0.05],
                      [0.15, 0.15, 0.35]], jnp.float32)

    params = init_params(kp)

    out = feature_volume_forward(feats, ref_poses, Ks, bbox,
                                 (img_h, img_w), params,
                                 volume_reso, volume_size)
    jax.block_until_ready(out)
    assert out.shape == (1, 16, volume_reso, volume_reso, volume_reso)
    print("KERNEL_OK")
</pallas_src>

<mosaic_0001>
module attributes {stable_mosaic.version = 11 : i64} {
  func.func @_mlp_meanvar_kernel(%arg0: i32, %arg1: memref<2x32x256xbf16, #tpu.memory_space<vmem>>, %arg2: memref<2x256xf32, #tpu.memory_space<vmem>>, %arg3: memref<32x32xbf16, #tpu.memory_space<vmem>>, %arg4: memref<32x1xf32, #tpu.memory_space<vmem>>, %arg5: memref<16x32xbf16, #tpu.memory_space<vmem>>, %arg6: memref<16x1xf32, #tpu.memory_space<vmem>>, %arg7: memref<8x16xbf16, #tpu.memory_space<vmem>>, %arg8: memref<8x1xf32, #tpu.memory_space<vmem>>, %arg9: memref<16x256xf32, #tpu.memory_space<vmem>>) attributes {dimension_semantics = [#tpu.dimension_semantics<parallel>], iteration_bounds = array<i64: 2>, scalar_prefetch = 0 : i64, scratch_operands = 0 : i64, tpu.core_type = #tpu.core_type<tc>, window_params = [{transform_indices = @transform_0, window_bounds = array<i64: 2, 32, 256>}, {transform_indices = @transform_1, window_bounds = array<i64: 2, 256>}, {pipeline_mode = #tpu.pipeline_mode<synchronous>, transform_indices = @transform_2, window_bounds = array<i64: 32, 32>}, {pipeline_mode = #tpu.pipeline_mode<synchronous>, transform_indices = @transform_3, window_bounds = array<i64: 32, 1>}, {pipeline_mode = #tpu.pipeline_mode<synchronous>, transform_indices = @transform_4, window_bounds = array<i64: 16, 32>}, {pipeline_mode = #tpu.pipeline_mode<synchronous>, transform_indices = @transform_5, window_bounds = array<i64: 16, 1>}, {pipeline_mode = #tpu.pipeline_mode<synchronous>, transform_indices = @transform_6, window_bounds = array<i64: 8, 16>}, {pipeline_mode = #tpu.pipeline_mode<synchronous>, transform_indices = @transform_7, window_bounds = array<i64: 8, 1>}, {transform_indices = @transform_8, window_bounds = array<i64: 16, 256>}]} {
    %c0 = arith.constant 0 : index
    %c0_0 = arith.constant 0 : index
    %0 = vector.load %arg3[%c0, %c0_0] : memref<32x32xbf16, #tpu.memory_space<vmem>>, vector<32x32xbf16>
    %c0_1 = arith.constant 0 : index
    %c0_2 = arith.constant 0 : index
    %1 = vector.load %arg5[%c0_1, %c0_2] : memref<16x32xbf16, #tpu.memory_space<vmem>>, vector<16x32xbf16>
    %c0_3 = arith.constant 0 : index
    %c0_4 = arith.constant 0 : index
    %2 = vector.load %arg7[%c0_3, %c0_4] : memref<8x16xbf16, #tpu.memory_space<vmem>>, vector<8x16xbf16>
    %c0_5 = arith.constant 0 : index
    %c0_6 = arith.constant 0 : index
    %3 = vector.load %arg4[%c0_5, %c0_6] : memref<32x1xf32, #tpu.memory_space<vmem>>, vector<32x1xf32>
    %4 = vector.shape_cast %3 : vector<32x1xf32> to vector<32x1xf32>
    %5 = vector.broadcast %4 : vector<32x1xf32> to vector<32x256xf32>
    %c0_7 = arith.constant 0 : index
    %c0_8 = arith.constant 0 : index
    %6 = vector.load %arg6[%c0_7, %c0_8] : memref<16x1xf32, #tpu.memory_space<vmem>>, vector<16x1xf32>
    %7 = vector.shape_cast %6 : vector<16x1xf32> to vector<16x1xf32>
    %8 = vector.broadcast %7 : vector<16x1xf32> to vector<16x256xf32>
    %c0_9 = arith.constant 0 : index
    %c0_10 = arith.constant 0 : index
    %9 = vector.load %arg8[%c0_9, %c0_10] : memref<8x1xf32, #tpu.memory_space<vmem>>, vector<8x1xf32>
    %10 = vector.shape_cast %9 : vector<8x1xf32> to vector<8x1xf32>
    %11 = vector.broadcast %10 : vector<8x1xf32> to vector<8x256xf32>
    %cst = arith.constant 0.000000e+00 : f32
    %12 = vector.broadcast %cst : f32 to vector<8x256xf32>
    %cst_11 = arith.constant 0.000000e+00 : f32
    %13 = vector.broadcast %cst_11 : f32 to vector<8x256xf32>
    %cst_12 = arith.constant 0.000000e+00 : f32
    %14 = vector.broadcast %cst_12 : f32 to vector<1x256xf32>
    %c0_13 = arith.constant 0 : index
    %c0_14 = arith.constant 0 : index
    %c0_15 = arith.constant 0 : index
    %15 = vector.load %arg1[%c0_13, %c0_14, %c0_15] : memref<2x32x256xbf16, #tpu.memory_space<vmem>>, vector<1x32x256xbf16>
    %16 = vector.shape_cast %15 : vector<1x32x256xbf16> to vector<32x256xbf16>
    %cst_16 = arith.constant dense<0.000000e+00> : vector<32x256xf32>
    %17 = tpu.matmul %0, %16, %cst_16 {dimension_numbers = #tpu.dot_dimension_numbers<[1], [0], [0], [1], [0, 0, 1, 1], [], []>} : vector<32x32xbf16>, vector<32x256xbf16>, vector<32x256xf32> -> vector<32x256xf32>
    %18 = arith.addf %17, %5 : vector<32x256xf32>
    %19 = arith.truncf %18 : vector<32x256xf32> to vector<32x256xbf16>
    %cst_17 = arith.constant 0.000000e+00 : bf16
    %20 = vector.broadcast %cst_17 : bf16 to vector<32x256xbf16>
    %21 = arith.maximumf %19, %20 : vector<32x256xbf16>
    %cst_18 = arith.constant dense<0.000000e+00> : vector<16x256xf32>
    %22 = tpu.matmul %1, %21, %cst_18 {dimension_numbers = #tpu.dot_dimension_numbers<[1], [0], [0], [1], [0, 0, 1, 1], [], []>} : vector<16x32xbf16>, vector<32x256xbf16>, vector<16x256xf32> -> vector<16x256xf32>
    %23 = arith.addf %22, %8 : vector<16x256xf32>
    %24 = arith.truncf %23 : vector<16x256xf32> to vector<16x256xbf16>
    %cst_19 = arith.constant 0.000000e+00 : bf16
    %25 = vector.broadcast %cst_19 : bf16 to vector<16x256xbf16>
    %26 = arith.maximumf %24, %25 : vector<16x256xbf16>
    %cst_20 = arith.constant dense<0.000000e+00> : vector<8x256xf32>
    %27 = tpu.matmul %2, %26, %cst_20 {dimension_numbers = #tpu.dot_dimension_numbers<[1], [0], [0], [1], [0, 0, 1, 1], [], []>} : vector<8x16xbf16>, vector<16x256xbf16>, vector<8x256xf32> -> vector<8x256xf32>
    %28 = arith.addf %27, %11 : vector<8x256xf32>
    %c0_21 = arith.constant 0 : index
    %c0_22 = arith.constant 0 : index
    %29 = vector.load %arg2[%c0_21, %c0_22] : memref<2x256xf32, #tpu.memory_space<vmem>>, vector<1x256xf32>
    %30 = vector.broadcast %29 : vector<1x256xf32> to vector<8x256xf32>
    %31 = arith.mulf %30, %28 : vector<8x256xf32>
    %32 = arith.addf %12, %31 : vector<8x256xf32>
    %33 = arith.mulf %28, %28 : vector<8x256xf32>
    %34 = vector.broadcast %29 : vector<1x256xf32> to vector<8x256xf32>
    %35 = arith.mulf %34, %33 : vector<8x256xf32>
    %36 = arith.addf %13, %35 : vector<8x256xf32>
    %37 = arith.addf %14, %29 : vector<1x256xf32>
    %c1 = arith.constant 1 : index
    %c0_23 = arith.constant 0 : index
    %c0_24 = arith.constant 0 : index
    %38 = vector.load %arg1[%c1, %c0_23, %c0_24] : memref<2x32x256xbf16, #tpu.memory_space<vmem>>, vector<1x32x256xbf16>
    %39 = vector.shape_cast %38 : vector<1x32x256xbf16> to vector<32x256xbf16>
    %cst_25 = arith.constant dense<0.000000e+00> : vector<32x256xf32>
    %40 = tpu.matmul %0, %39, %cst_25 {dimension_numbers = #tpu.dot_dimension_numbers<[1], [0], [0], [1], [0, 0, 1, 1], [], []>} : vector<32x32xbf16>, vector<32x256xbf16>, vector<32x256xf32> -> vector<32x256xf32>
    %41 = arith.addf %40, %5 : vector<32x256xf32>
    %42 = arith.truncf %41 : vector<32x256xf32> to vector<32x256xbf16>
    %cst_26 = arith.constant 0.000000e+00 : bf16
    %43 = vector.broadcast %cst_26 : bf16 to vector<32x256xbf16>
    %44 = arith.maximumf %42, %43 : vector<32x256xbf16>
    %cst_27 = arith.constant dense<0.000000e+00> : vector<16x256xf32>
    %45 = tpu.matmul %1, %44, %cst_27 {dimension_numbers = #tpu.dot_dimension_numbers<[1], [0], [0], [1], [0, 0, 1, 1], [], []>} : vector<16x32xbf16>, vector<32x256xbf16>, vector<16x256xf32> -> vector<16x256xf32>
    %46 = arith.addf %45, %8 : vector<16x256xf32>
    %47 = arith.truncf %46 : vector<16x256xf32> to vector<16x256xbf16>
    %cst_28 = arith.constant 0.000000e+00 : bf16
    %48 = vector.broadcast %cst_28 : bf16 to vector<16x256xbf16>
    %49 = arith.maximumf %47, %48 : vector<16x256xbf16>
    %cst_29 = arith.constant dense<0.000000e+00> : vector<8x256xf32>
    %50 = tpu.matmul %2, %49, %cst_29 {dimension_numbers = #tpu.dot_dimension_numbers<[1], [0], [0], [1], [0, 0, 1, 1], [], []>} : vector<8x16xbf16>, vector<16x256xbf16>, vector<8x256xf32> -> vector<8x256xf32>
    %51 = arith.addf %50, %11 : vector<8x256xf32>
    %c1_30 = arith.constant 1 : index
    %c0_31 = arith.constant 0 : index
    %52 = vector.load %arg2[%c1_30, %c0_31] : memref<2x256xf32, #tpu.memory_space<vmem>>, vector<1x256xf32>
    %53 = vector.broadcast %52 : vector<1x256xf32> to vector<8x256xf32>
    %54 = arith.mulf %53, %51 : vector<8x256xf32>
    %55 = arith.addf %32, %54 : vector<8x256xf32>
    %56 = arith.mulf %51, %51 : vector<8x256xf32>
    %57 = vector.broadcast %52 : vector<1x256xf32> to vector<8x256xf32>
    %58 = arith.mulf %57, %56 : vector<8x256xf32>
    %59 = arith.addf %36, %58 : vector<8x256xf32>
    %60 = arith.addf %37, %52 : vector<1x256xf32>
    %61 = arith.mulf %55, %55 : vector<8x256xf32>
    %cst_32 = arith.constant 2.000000e+00 : f32
    %62 = vector.broadcast %cst_32 : f32 to vector<1x256xf32>
    %63 = arith.subf %62, %60 : vector<1x256xf32>
    %64 = vector.broadcast %63 : vector<1x256xf32> to vector<8x256xf32>
    %65 = arith.mulf %61, %64 : vector<8x256xf32>
    %66 = arith.subf %59, %65 : vector<8x256xf32>
    %cst_33 = arith.constant 0.000000e+00 : f32
    %67 = vector.broadcast %cst_33 : f32 to vector<8x256xf32>
    %68 = arith.maximumf %66, %67 : vector<8x256xf32>
    %c0_34 = arith.constant 0 : index
    %c0_35 = arith.constant 0 : index
    %69 = vector.load %arg9[%c0_34, %c0_35] : memref<16x256xf32, #tpu.memory_space<vmem>>, vector<8x256xf32>
    tpu.vector_store %arg9[%c0_34, %c0_35], %55 {strides = array<i32>} : memref<16x256xf32, #tpu.memory_space<vmem>>, vector<8x256xf32>,
    %c8 = arith.constant 8 : index
    %c0_36 = arith.constant 0 : index
    %70 = vector.load %arg9[%c8, %c0_36] : memref<16x256xf32, #tpu.memory_space<vmem>>, vector<8x256xf32>
    tpu.vector_store %arg9[%c8, %c0_36], %68 {strides = array<i32>} : memref<16x256xf32, #tpu.memory_space<vmem>>, vector<8x256xf32>,
    return
  }
  func.func @transform_0(%arg0: i32) -> (i32, i32, i32) {
    %c0_i32 = arith.constant 0 : i32
    %c0_i32_0 = arith.constant 0 : i32
    %c0_i32_1 = arith.constant 0 : i32
    return %c0_i32, %c0_i32_0, %arg0 : i32, i32, i32
  }
  func.func @transform_1(%arg0: i32) -> (i32, i32) {
    %c0_i32 = arith.constant 0 : i32
    %c0_i32_0 = arith.constant 0 : i32
    return %c0_i32, %arg0 : i32, i32
  }
  func.func @transform_2(%arg0: i32) -> (i32, i32) {
    %c0_i32 = arith.constant 0 : i32
    %c0_i32_0 = arith.constant 0 : i32
    %c0_i32_1 = arith.constant 0 : i32
    return %c0_i32, %c0_i32_0 : i32, i32
  }
  func.func @transform_3(%arg0: i32) -> (i32, i32) {
    %c0_i32 = arith.constant 0 : i32
    %c0_i32_0 = arith.constant 0 : i32
    %c0_i32_1 = arith.constant 0 : i32
    return %c0_i32, %c0_i32_0 : i32, i32
  }
  func.func @transform_4(%arg0: i32) -> (i32, i32) {
    %c0_i32 = arith.constant 0 : i32
    %c0_i32_0 = arith.constant 0 : i32
    %c0_i32_1 = arith.constant 0 : i32
    return %c0_i32, %c0_i32_0 : i32, i32
  }
  func.func @transform_5(%arg0: i32) -> (i32, i32) {
    %c0_i32 = arith.constant 0 : i32
    %c0_i32_0 = arith.constant 0 : i32
    %c0_i32_1 = arith.constant 0 : i32
    return %c0_i32, %c0_i32_0 : i32, i32
  }
  func.func @transform_6(%arg0: i32) -> (i32, i32) {
    %c0_i32 = arith.constant 0 : i32
    %c0_i32_0 = arith.constant 0 : i32
    %c0_i32_1 = arith.constant 0 : i32
    return %c0_i32, %c0_i32_0 : i32, i32
  }
  func.func @transform_7(%arg0: i32) -> (i32, i32) {
    %c0_i32 = arith.constant 0 : i32
    %c0_i32_0 = arith.constant 0 : i32
    %c0_i32_1 = arith.constant 0 : i32
    return %c0_i32, %c0_i32_0 : i32, i32
  }
  func.func @transform_8(%arg0: i32) -> (i32, i32) {
    %c0_i32 = arith.constant 0 : i32
    %c0_i32_0 = arith.constant 0 : i32
    return %c0_i32, %arg0 : i32, i32
  }
}

</mosaic_0001>

<bundles_post_ra>
// kernel: feature_volume_forward.1
= control target key start
LH: loop header
LB: loop body
LE: loop exit
PB: predicated region body
PF: predicated region fallthrough
CT: control target
= control target key end

     0   :  { %s1140_s27 = smov 0   ;;  %s1142_s28 = smov 0   ;;  %s1271_s0 = inlined_call_operand.vmem [shape: bf16[2,32,512], index: 0, kind: input, shape index: {}]   ;;  %s1272_s1 = inlined_call_operand.vmem [shape: f32[2,512], index: 1, kind: input, shape index: {}]   ;;  %s1273_s2 = inlined_call_operand.vmem [shape: bf16[32,32], index: 2, kind: input, shape index: {}]   ;;  %s1274_s3 = inlined_call_operand.vmem [shape: f32[32,1], index: 3, kind: input, shape index: {}]   ;;  %s1275_s4 = inlined_call_operand.vmem [shape: bf16[16,32], index: 4, kind: input, shape index: {}]   ;;  %s1276_s5 = inlined_call_operand.vmem [shape: f32[16,1], index: 5, kind: input, shape index: {}]   ;;  %s1277_s6 = inlined_call_operand.vmem [shape: bf16[8,16], index: 6, kind: input, shape index: {}]   ;;  %s1278_s7 = inlined_call_operand.vmem [shape: f32[8,1], index: 7, kind: input, shape index: {}]   ;;  %s1279_s8 = inlined_call_operand.vmem [shape: f32[16,512], index: 8, kind: output, shape index: {}]  }
   0x1   :  { %s1144_s29 = smov 0  }
   0x2 LB: > { %s1156_s30 = sadd.s32 4294967295, %s1092_s29   ;;  %s1159_s9 = sadd.s32 1, %s1092_s29   ;;  %s1092_s29 = sphi %s1144_s29, %s1283_s29   ;;  %s1088_s28 = sphi %s1142_s28, %s1282_s28   ;;  %s1084_s27 = sphi %s1140_s27, %s1281_s27  }
   0x3   : > { %s22_s10 = ssub.s32 %s1092_s29, %s1159_s9  ;;  %s25_s11 = sadd.s32 1, %s1088_s28 }
   0x4   : > { %p23_p0 = scmp.eq.s32.totalorder %s22_s10, 0  ;;  %p32_p1 = scmp.ne.s32.totalorder %s1088_s28, %s1084_s27 }
   0x5   : > { %p33_p2 = scmp.eq.s32.totalorder %s1092_s29, 0  ;;  %p214_p3 = scmp.eq.s32.totalorder %s1156_s30, 1 }
   0x6   : > { %s1169_s12 = scalar_select %p23_p0, %s1088_s28, %s25_s11  }
   0x7   : > { %p34_p4 = por %p33_p2, %p32_p1  ;;  %p1171_p5 = por %p214_p3, %p32_p1 }
   0x8   : > { %p988_p6 = scmp.ge.s32.totalorder %s1092_s29, 2 }
   0xa   : > { %254 = sbr.rel (%p988_p6) target bundleno = 25 (0x19), region = 40 }
  0x11   : > { %257 = sbr.rel (!%p34_p4) target bundleno = 25 (0x19), region = 44  ;;  %s259_s14 = sand.u32 (%p34_p4), 1, %s1088_s28  }
  0x12   : > { %s1026_s15 = sshll.u32 (%p34_p4), %s1092_s29, 3  ;;  %s989_s16 = sshll.u32 (%p34_p4), %s259_s14, 6 }
  0x13   : > { %s264_s19 = scalar_lea.vmem (%p34_p4), %s1271_s0, %s1026_s15  ;;  %s261_s20 = scalar_lea.vmem (%p34_p4), [#allocation2], %s989_s16 }
  0x14   : > { %v306_v0 = vld [vmem:[%s264_s19] sm:$0xff] (%p34_p4)  ;;  %v308_v1 = vld [vmem:[%s264_s19 + $0x10] sm:$0xff] (%p34_p4) }
  0x15   : > { %v310_v2 = vld [vmem:[%s264_s19 + $0x20] sm:$0xff] (%p34_p4)  ;;  %307 = vst [vmem:[%s261_s20] sm:$0xff] (%p34_p4), %v306_v0  ;;  %309 = vst [vmem:[%s261_s20 + $0x8] sm:$0xff] (%p34_p4), %v308_v1  ;;  %v312_v3 = vld [vmem:[%s264_s19 + $0x30] sm:$0xff] (%p34_p4) }
  0x16   : > { %311 = vst [vmem:[%s261_s20 + $0x10] sm:$0xff] (%p34_p4), %v310_v2  ;;  %v314_v4 = vld [vmem:[%s264_s19 + $0x40] sm:$0xff] (%p34_p4)  ;;  %v316_v5 = vld [vmem:[%s264_s19 + $0x50] sm:$0xff] (%p34_p4)  ;;  %313 = vst [vmem:[%s261_s20 + $0x18] sm:$0xff] (%p34_p4), %v312_v3 }
  0x17   : > { %315 = vst [vmem:[%s261_s20 + $0x20] sm:$0xff] (%p34_p4), %v314_v4  ;;  %317 = vst [vmem:[%s261_s20 + $0x28] sm:$0xff] (%p34_p4), %v316_v5  ;;  %v318_v6 = vld [vmem:[%s264_s19 + $0x60] sm:$0xff] (%p34_p4)  ;;  %v320_v7 = vld [vmem:[%s264_s19 + $0x70] sm:$0xff] (%p34_p4) }
  0x18   : > { %319 = vst [vmem:[%s261_s20 + $0x30] sm:$0xff] %v318_v6  ;;  %321 = vst [vmem:[%s261_s20 + $0x38] sm:$0xff] %v320_v7 }
  0x19 PF: > { %p992_p7 = scmp.ge.s32.totalorder %s1092_s29, 1  ;;  %p335_p8 = scmp.lt.s32.totalorder %s1092_s29, 3 }
  0x1b   : > { %p336_p9 = pnand %p992_p7, %p335_p8 }
  0x1c   : > { %s342_s21 = sand.u32 (!%p336_p9), 1, %s1084_s27   ;;  %v1094_v8 = vmov (!%p336_p9), 0   ;;  %v395_v9 = vld [vmem:[%s1274_s3] sm:$0xff] (!%p336_p9)  ;;  %v396_v10 = vld [vmem:[%s1274_s3 + $0x8] sm:$0xff] (!%p336_p9)  ;;  %v397_v16 = vld [vmem:[%s1274_s3 + $0x10] sm:$0xff] (!%p336_p9)  ;;  %vm471_vm0 = vcmask (!%p336_p9), 261120  }
  0x1d   : > { %339 = sbr.rel (%p336_p9) target bundleno = 967 (0x3c7), region = 86  ;;  %s993_s22 = sshll.u32 (!%p336_p9), %s342_s21, 6  ;;  %510 = vmatprep.mubr.bf16.mxu0 (!%p336_p9), %v1094_v8  ;;  %1053 = vset.pattern.permute.xlu0 (!%p336_p9), %v1094_v8  ;;  %v419_v17 = vld [vmem:[%s1276_s5] sm:$0xff] (!%p336_p9)  ;;  %v398_v20 = vld [vmem:[%s1274_s3 + $0x18] sm:$0xff] (!%p336_p9)  ;;  %v420_v24 = vld [vmem:[%s1276_s5 + $0x8] sm:$0xff] (!%p336_p9)  ;;  %vm594_vm1 = vcmask (!%p336_p9), 130048  }
  0x1e   : > { %1054 = vset.pattern.permute.xlu1 (!%p336_p9), %v1094_v8  ;;  %579 = vmatprep.mubr.bf16.mxu1 (!%p336_p9), %v1094_v8  ;;  %s344_s29 = scalar_lea.vmem (!%p336_p9), [#allocation2], %s993_s22  ;;  %v1061_v18 = vld [vmem:[%s1273_s2] sm:$0xff] (!%p336_p9)   ;;  %v1062_v25 = vld [vmem:[%s1273_s2 + $0x8] sm:$0xff] (!%p336_p9)   ;;  %s995_s15 = sshll.u32 (!%p336_p9), %s1156_s30, 1 }
  0x1f   : > { %v1055_v11 = vld [vmem:[%s344_s29 + $0x4] ss:$8 sps:$4 sm:$0xff] (!%p336_p9)   ;;  %401 = vperm.xlu0 (!%p336_p9), %1053, %v395_v9   ;;  %v1057_v12 = vld [vmem:[%s344_s29] ss:$8 sps:$4 sm:$0xff] (!%p336_p9)   ;;  %v1058_v13 = vld [vmem:[%s344_s29 + $0x14] ss:$8 sps:$4 sm:$0xff] (!%p336_p9)   ;;  %411 = vperm.xlu1 (!%p336_p9), %1054, %v397_v16  }
  0x20   : > { %478 = vmatprep.subr.bf16.mxu0 (!%p336_p9), %v1055_v11  ;;  %v1060_v14 = vld [vmem:[%s344_s29 + $0x10] ss:$8 sps:$4 sm:$0xff] (!%p336_p9)   ;;  %v1065_v15 = vld [vmem:[%s344_s29 + $0x24] ss:$8 sps:$4 sm:$0xff] (!%p336_p9)   ;;  %v1063_v19 = vld [vmem:[%s344_s29 + $0x20] ss:$8 sps:$4 sm:$0xff] (!%p336_p9)  }
  0x21   : > { %479 = vmatpush1.bf16.msra.mxu0 (!%p336_p9), %v1057_v12  ;;  %v1068_v21 = vld [vmem:[%s344_s29 + $0x34] ss:$8 sps:$4 sm:$0xff] (!%p336_p9)   ;;  %v431_v22 = vld [vmem:[%s1278_s7] sm:$0xff] (!%p336_p9)  ;;  %v1066_v23 = vld [vmem:[%s344_s29 + $0x30] ss:$8 sps:$4 sm:$0xff] (!%p336_p9)   ;;  %p381_p10 = scmp.lt.s32.totalorder (!%p336_p9), %s995_s15, 3 }
  0x22   : > { %480 = vmatprep.subr.bf16.mxu0 (!%p336_p9), %v1058_v13  ;;  %v1069_v57 = vld [vmem:[%s1275_s4] sm:$0xff] (!%p336_p9)   ;;  %s994_s20 = sshll.u32 (!%p336_p9), %s342_s21, 5 }
  0x23   : > { %406 = vperm.xlu0 (!%p336_p9), %1053, %v396_v10   ;;  %416 = vperm.xlu1 (!%p336_p9), %1054, %v398_v20   ;;  %s378_s27 = scalar_lea.vmem (!%p336_p9), [#allocation3], %s994_s20 }
  0x24   : > { %s1285_s15 = smov (!%p381_p10, %s995_s15), 3  ;;  %s1027_s21 = sshll.u32 (%p1171_p5), %s1156_s30, 4 }
  0x25   : > { %481 = vmatpush1.bf16.msra.mxu0 %v1060_v14  ;;  %s996_s16 = sshll.u32 %s1285_s15, 1  ;;  %s893_s24 = scalar_lea.vmem (%p1171_p5), %s1279_s8, %s1027_s21 }
  0x26   : > { %687 = vmatprep.subr.bf16.mxu0 %v1065_v15  ;;  %s384_s19 = scalar_lea.vmem %s1272_s1, %s996_s16 }
  0x27   : > { %423 = vperm.xlu0 %1053, %v419_v17   ;;  %428 = vperm.xlu1 %1054, %v420_v24  }
  0x28   : > { %1003 = vmatmul.mubr.msk.bf16.vlgmr.msra.gmra.mrb[0].mxu0 %vm471_vm0, %v1061_v18 }
  0x29   : > { %520 = vmatprep.mubr.bf16.mxu0 %v1094_v8  ;;  %688 = vmatpush1.bf16.msra.mxu0 %v1063_v19 }
  0x2a   : > { %689 = vmatprep.subr.bf16.mxu0 %v1068_v21 }
  0x2b   : > { %434 = vperm.xlu0 %1053, %v431_v22  }
  0x2d   : > { %690 = vmatpush1.bf16.msra.mxu0 %v1066_v23 }
  0x30   : > { %1004 = vmatmul.mubr.msk.bf16.gmra.mrb[4].mxu0 %vm471_vm0, %v1062_v25 }
  0x31   : > { %719 = vmatprep.mubr.bf16.mxu0 %v1094_v8 }
  0x38   : > { %1016 = vmatmul.mubr.msk.bf16.vlgmr.msra.gmra.mrb[8].mxu0 %vm471_vm0, %v1061_v18 }
  0x39   : > { %729 = vmatprep.mubr.bf16.mxu0 %v1094_v8 }
  0x40   : > { %1017 = vmatmul.mubr.msk.bf16.gmra.mrb[12].mxu0 %vm471_vm0, %v1062_v25 }
  0x9e   : > { %v402_v26 = vpop.permute.xlu0 %401  ;;  %v412_v34 = vpop.permute.xlu1 %411 }
  0xa2   : > { %v407_v29 = vpop.permute.xlu0 %406  ;;  %v417_v43 = vpop.permute.xlu1 %416 }
  0xa6   : > { %v424_v13 = vpop.permute.xlu0 %423  ;;  %v429_v15 = vpop.permute.xlu1 %428 }
  0xfb   : > { %v512_v27 = vpop.f32.mrb[0].mxu0 }
  0xfc   : > { %v514_v28 = vpop.f32.mrb[1].mxu0  ;;  %v513_v31 = vadd.f32 %v512_v27, %v402_v26  ;;  %v394_v27 = vld [vmem:[%s1277_s6] sm:$0xf] }
  0xfd   : > { %v516_v30 = vpop.f32.mrb[2].mxu0  ;;  %v515_v35 = vadd.f32 %v514_v28, %v402_v26 }
  0xfe   : > { %v517_v32 = vadd.f32 %v516_v30, %v407_v29  ;;  %v518_v33 = vpop.f32.mrb[3].mxu0 }
  0xff   : > { %v519_v36 = vadd.f32 %v518_v33, %v407_v29 }
 0x100   : > { %v531_v37 = vpack.c.bf16 %v517_v32, %v513_v31 }
 0x101   : > { %v532_v38 = vpack.c.bf16 %v519_v36, %v515_v35 }
 0x102   : > { %v535_v42 = vmax.bf16 %v1094_v8, %v531_v37 }
 0x103   : > { %v522_v39 = vpop.f32.mrb[4].mxu0  ;;  %v536_v40 = vmax.bf16 %v1094_v8, %v532_v38 }
 0x104   : > { %v524_v41 = vpop.f32.mrb[5].mxu0  ;;  %v523_v45 = vadd.f32 %v522_v39, %v412_v34 }
 0x105   : > { %v526_v44 = vpop.f32.mrb[6].mxu0  ;;  %547 = vmatprep.subr.bf16.mxu1 %v536_v40  ;;  %v525_v48 = vadd.f32 %v524_v41, %v412_v34 }
 0x106   : > { %v527_v46 = vadd.f32 %v526_v44, %v417_v43  ;;  %v528_v47 = vpop.f32.mrb[7].mxu0  ;;  %548 = vmatpush1.bf16.msra.mxu1 %v535_v42 }
 0x107   : > { %v529_v49 = vadd.f32 %v528_v47, %v417_v43  ;;  %v641_v47 = vlaneseq }
 0x108   : > { %v533_v50 = vpack.c.bf16 %v527_v46, %v523_v45 }
 0x109   : > { %v534_v51 = vpack.c.bf16 %v529_v49, %v525_v48  ;;  %v642_v48 = vshrl.u32 %v641_v47, 7  ;;  %v639_v49 = vld [vmem:[%s384_s19] ss:$2 sm:$0x3] }
 0x10a   : > { %v537_v55 = vmax.bf16 %v1094_v8, %v533_v50 }
 0x10b   : > { %v721_v52 = vpop.f32.mrb[8].mxu0  ;;  %v538_v53 = vmax.bf16 %v1094_v8, %v534_v51  ;;  %v643_v50 = vsub.s32 0, %v642_v48  ;;  %v435_v51 = vpop.permute.xlu0 %434 }
 0x10c   : > { %v723_v54 = vpop.f32.mrb[9].mxu0  ;;  %v722_v58 = vadd.f32 %v721_v52, %v402_v26  ;;  %v647_v52 = vsub.s32 1, %v642_v48 }
 0x10d   : > { %549 = vmatprep.subr.bf16.mxu1 %v538_v53  ;;  %v725_v56 = vpop.f32.mrb[10].mxu0  ;;  %v724_v61 = vadd.f32 %v723_v54, %v402_v26 }
 0x10e   : > { %v726_v59 = vadd.f32 %v725_v56, %v407_v29  ;;  %550 = vmatpush1.bf16.msra.mxu1 %v537_v55  ;;  %v727_v60 = vpop.f32.mrb[11].mxu0  ;;  %v644_v56 = vrot.slane %v639_v49, %v643_v50 }
 0x10f   : > { %v728_v62 = vadd.f32 %v727_v60, %v407_v29 }
 0x110   : > { %v740_v63 = vpack.c.bf16 %v726_v59, %v722_v58  ;;  %v648_v58 = vrot.slane %v639_v49, %v647_v52 }
 0x111   : > { %v741_v0 = vpack.c.bf16 %v728_v62, %v724_v61  ;;  %1006 = vmatmul.mubr.msk.bf16.vlgmr.msra.gmra.mrb[0].mxu1 %vm471_vm0, %v1069_v57 }
 0x112   : > { %630 = vmatprep.mubr.bf16.mxu1 %v1094_v8  ;;  %v744_v28 = vmax.bf16 %v1094_v8, %v740_v63 }
 0x113   : > { %v731_v1 = vpop.f32.mrb[12].mxu0  ;;  %v745_v26 = vmax.bf16 %v1094_v8, %v741_v0 }
 0x114   : > { %v733_v2 = vpop.f32.mrb[13].mxu0  ;;  %v732_v4 = vadd.f32 %v731_v1, %v412_v34 }
 0x115   : > { %v735_v3 = vpop.f32.mrb[14].mxu0  ;;  %v734_v7 = vadd.f32 %v733_v2, %v412_v34 }
 0x116   : > { %v736_v5 = vadd.f32 %v735_v3, %v417_v43  ;;  %v737_v6 = vpop.f32.mrb[15].mxu0 }
 0x117   : > { %v738_v9 = vadd.f32 %v737_v6, %v417_v43 }
 0x118   : > { %v742_v10 = vpack.c.bf16 %v736_v5, %v732_v4 }
 0x119   : > { %v743_v11 = vpack.c.bf16 %v738_v9, %v734_v7 }
 0x11a   : > { %v746_v30 = vmax.bf16 %v1094_v8, %v742_v10 }
 0x11b   : > { %v747_v29 = vmax.bf16 %v1094_v8, %v743_v11 }
 0x1e4   : > { %v581_v12 = vpop.f32.mrb[0].mxu1 }
 0x1e5   : > { %v583_v14 = vpop.f32.mrb[1].mxu1  ;;  %v582_v17 = vadd.f32 %v581_v12, %v424_v13 }
 0x1e6   : > { %v585_v16 = vpop.f32.mrb[2].mxu1  ;;  %v584_v20 = vadd.f32 %v583_v14, %v424_v13 }
 0x1e7   : > { %v586_v18 = vadd.f32 %v585_v16, %v429_v15  ;;  %v587_v19 = vpop.f32.mrb[3].mxu1 }
 0x1e8   : > { %v588_v21 = vadd.f32 %v587_v19, %v429_v15 }
 0x1e9   : > { %v590_v22 = vpack.c.bf16 %v586_v18, %v582_v17 }
 0x1ea   : > { %v591_v23 = vpack.c.bf16 %v588_v21, %v584_v20 }
 0x1eb   : > { %v592_v25 = vmax.bf16 %v1094_v8, %v590_v22 }
 0x1ec   : > { %v593_v24 = vmax.bf16 %v1094_v8, %v591_v23 }
 0x1ee   : > { %598 = vmatprep.subr.bf16.mxu1 %v593_v24 }
 0x1ef   : > { %599 = vmatpush1.bf16.msra.mxu1 %v592_v25 }
 0x1f0   : > { %748 = vmatprep.subr.bf16.mxu1 %v745_v26 }
 0x1f2   : > { %1007 = vmatmul.mubr.msk.bf16.vlgmr.msra.gmra.mrb[4].mxu1 %vm594_vm1, %v394_v27 }
 0x1f3   : > { %749 = vmatpush1.bf16.msra.mxu1 %v744_v28  ;;  %780 = vmatprep.mubr.bf16.mxu1 %v1094_v8 }
 0x1f4   : > { %750 = vmatprep.subr.bf16.mxu1 %v747_v29 }
 0x1f7   : > { %751 = vmatpush1.bf16.msra.mxu1 %v746_v30 }
 0x1fa   : > { %1018 = vmatmul.mubr.msk.bf16.vlgmr.msra.gmra.mrb[8].mxu1 %vm471_vm0, %v1069_v57 }
 0x1fb   : > { %827 = vmatprep.mubr.bf16.mxu1 %v1094_v8 }
 0x2c5   : > { %v632_v31 = vpop.f32.mrb[4].mxu1 }
 0x2c6   : > { %v634_v32 = vpop.f32.mrb[5].mxu1  ;;  %v633_v53 = vadd.f32 %v632_v31, %v435_v51 }
 0x2c7   : > { %v636_v33 = vpop.f32.mrb[6].mxu1  ;;  %v635_v55 = vadd.f32 %v634_v32, %v435_v51 }
 0x2c8   : > { %v637_v34 = vpop.f32.mrb[7].mxu1  ;;  %v655_v61 = vmul.f32 %v633_v53, %v633_v53  ;;  %v651_v4 = vmul.f32 %v644_v56, %v633_v53 }
 0x2c9   : > { %v656_v1 = vmul.f32 %v635_v55, %v635_v55  ;;  %v652_v9 = vmul.f32 %v648_v58, %v635_v55 }
 0x2ca   : > { %v657_v12 = vmul.f32 %v655_v61, %v644_v56 }
 0x2cb   : > { %v658_v16 = vmul.f32 %v656_v1, %v648_v58 }
 0x2cd   : > { %v782_v35 = vpop.f32.mrb[8].mxu1 }
 0x2ce   : > { %v784_v36 = vpop.f32.mrb[9].mxu1  ;;  %v783_v38 = vadd.f32 %v782_v35, %v424_v13 }
 0x2cf   : > { %v786_v37 = vpop.f32.mrb[10].mxu1  ;;  %v785_v41 = vadd.f32 %v784_v36, %v424_v13 }
 0x2d0   : > { %v787_v39 = vadd.f32 %v786_v37, %v429_v15  ;;  %v788_v40 = vpop.f32.mrb[11].mxu1 }
 0x2d1   : > { %v789_v42 = vadd.f32 %v788_v40, %v429_v15 }
 0x2d2   : > { %v791_v43 = vpack.c.bf16 %v787_v39, %v783_v38 }
 0x2d3   : > { %v792_v44 = vpack.c.bf16 %v789_v42, %v785_v41 }
 0x2d4   : > { %v793_v46 = vmax.bf16 %v1094_v8, %v791_v43 }
 0x2d5   : > { %v794_v45 = vmax.bf16 %v1094_v8, %v792_v44  ;;  %v1020_v8 = vld [vmem:[%s384_s19 + $0x1] ss:$2 sm:$0x3] }
 0x2d6   : > { %v859_v54 = vadd.f32 %v1020_v8, %v639_v49  ;;  %v842_v57 = vrot.slane %v1020_v8, %v643_v50  ;;  %v846_v60 = vrot.slane %v1020_v8, %v647_v52 }
 0x2d7   : > { %795 = vmatprep.subr.bf16.mxu1 %v794_v45 }
 0x2d8   : > { %796 = vmatpush1.bf16.msra.mxu1 %v793_v46  ;;  %v862_v63 = vsub.f32 2.0, %v859_v54 }
 0x2da   : > { %v867_v15 = vrot.slane %v862_v63, %v643_v50  ;;  %v871_v19 = vrot.slane %v862_v63, %v647_v52 }
 0x2db   : > { %1019 = vmatmul.mubr.msk.bf16.vlgmr.msra.gmra.mrb[12].mxu1 %vm594_vm1, %v394_v27 }
 0x3ae   : > { %v829_v59 = vpop.f32.mrb[12].mxu1 }
 0x3af   : > { %v830_v62 = vadd.f32 %v829_v59, %v435_v51  ;;  %v831_v0 = vpop.f32.mrb[13].mxu1 }
 0x3b0   : > { %v832_v2 = vadd.f32 %v831_v0, %v435_v51  ;;  %v833_v3 = vpop.f32.mrb[14].mxu1 }
 0x3b1   : > { %v849_v5 = vmul.f32 %v842_v57, %v830_v62  ;;  %v853_v6 = vmul.f32 %v830_v62, %v830_v62  ;;  %v834_v7 = vpop.f32.mrb[15].mxu1 }
 0x3b2   : > { %v850_v10 = vmul.f32 %v846_v60, %v832_v2  ;;  %v854_v11 = vmul.f32 %v832_v2, %v832_v2 }
 0x3b3   : > { %v851_v13 = vadd.f32 %v849_v5, %v651_v4  ;;  %v855_v14 = vmul.f32 %v853_v6, %v842_v57 }
 0x3b4   : > { %v852_v17 = vadd.f32 %v850_v10, %v652_v9  ;;  %v856_v18 = vmul.f32 %v854_v11, %v846_v60 }
 0x3b5   : > { %v857_v20 = vadd.f32 %v855_v14, %v657_v12  ;;  %v860_v21 = vmul.f32 %v851_v13, %v851_v13  ;;  %880 = vst [vmem:[%s378_s27] sm:$0xff] %v851_v13 }
 0x3b6   : > { %v858_v22 = vadd.f32 %v856_v18, %v658_v16  ;;  %v861_v23 = vmul.f32 %v852_v17, %v852_v17  ;;  %881 = vst [vmem:[%s378_s27 + $0x8] sm:$0xff] %v852_v17 }
 0x3b7   : > { %v874_v24 = vmul.f32 %v867_v15, %v860_v21 }
 0x3b8   : > { %v875_v25 = vmul.f32 %v871_v19, %v861_v23  ;;  %890 = sbr.rel (!%p1171_p5) target bundleno = 967 (0x3c7), region = 94 }
 0x3b9   : > { %v876_v26 = vsub.f32 %v857_v20, %v874_v24 }
 0x3ba   : > { %v877_v27 = vsub.f32 %v858_v22, %v875_v25 }
 0x3bb   : > { %v878_v28 = vmax.f32 %v876_v26, 0.0 }
 0x3bc   : > { %v879_v29 = vmax.f32 %v877_v27, 0.0  ;;  %v906_v30 = vld [vmem:[%s378_s27] sm:$0xff] (%p1171_p5) }
 0x3bd   : > { %882 = vst [vmem:[%s378_s27 + $0x10] sm:$0xff] %v878_v28  ;;  %v908_v31 = vld [vmem:[%s378_s27 + $0x8] sm:$0xff] (%p1171_p5)  ;;  %907 = vst [vmem:[%s893_s24] sm:$0xff] (%p1171_p5), %v906_v30 }
 0x3be   : > { %883 = vst [vmem:[%s378_s27 + $0x18] sm:$0xff] %v879_v29  ;;  %909 = vst [vmem:[%s893_s24 + $0x8] sm:$0xff] (%p1171_p5), %v908_v31 }
 0x3c4   : > { %v910_v32 = vld [vmem:[%s378_s27 + $0x10] sm:$0xff] }
 0x3c5   : > { %v912_v33 = vld [vmem:[%s378_s27 + $0x18] sm:$0xff]  ;;  %911 = vst [vmem:[%s893_s24 + $0x20] sm:$0xff] %v910_v32 }
 0x3c6   : > { %913 = vst [vmem:[%s893_s24 + $0x28] sm:$0xff] %v912_v33 }
 0x3c7 PF: > { %p15_p11 = scmp.ge.s32.totalorder %s1159_s9, 4   ;;  %s1281_s27 = smov %s1088_s28 }
 0x3c8   : > { %s1282_s28 = smov %s1169_s12  ;;  %s1283_s29 = smov %s1159_s9 }
 0x3c9   :  { %17 = sbr.rel (!%p15_p11) target bundleno = 2 (0x2), region = 153 }

</bundles_post_ra>
